<compile_context>
chip_gen: v7x
topology: tpu7x:2x2x1
jax: 0.10.0
libtpu: 0.0.40
codegen_flags: <defaults>
</compile_context>

<pallas_src>
import math

import jax
import jax.numpy as jnp
from jax import lax
from jax.experimental import pallas as pl
from jax.experimental.pallas import tpu as pltpu  # noqa: F401  (TPU backend)

# ---- config (small, consistent with the module's forward) ----
B = 2          # batch
L = 8          # sequence length
D = 32         # d_model
H = 4          # num_heads
DK = D // H    # d_k
DFF = 64       # d_ff
EPS = 1e-6
NEG_INF = 1.0e9

# ---- packed-parameter slab layout: one (168, 96) f32 array, lane offset always 0,
#      weight sub-slabs start at sublane offsets that are multiples of 8 ----
_PW = 3 * D                 # slab width = 96 lanes
_R_WQKV = 0                 # rows   0: 32  -> (D, 3D)   fused QKV weight (Q cols pre-scaled)
_R_W0 = D                   # rows  32: 64  -> (D, D)    w_0
_R_W1 = 2 * D               # rows  64: 96  -> (D, DFF)  FFN linear_1
_R_W2 = 3 * D               # rows  96:160  -> (DFF, D)  FFN linear_2
_R_VEC = 3 * D + DFF        # rows 160:168  -> bqkv, g1, be1, b0, g2, be2, b2, b1
_N_ROWS = _R_VEC + 8        # 168


def encoder_layer_kernel(x_ref, mask_ref, p_ref, o_ref):
    x = x_ref[...]                                        # (B*L, D) f32

    # ---- static slices of the packed parameter slab (single DMA) ----
    wqkv = p_ref[_R_WQKV:_R_WQKV + D, :]                  # (D, 3D)
    w0 = p_ref[_R_W0:_R_W0 + D, 0:D]                      # (D, D)
    w1 = p_ref[_R_W1:_R_W1 + D, 0:DFF]                    # (D, DFF)
    w2 = p_ref[_R_W2:_R_W2 + DFF, 0:D]                    # (DFF, D)
    bqkv = p_ref[_R_VEC + 0:_R_VEC + 1, :]                # (1, 3D)
    g1 = p_ref[_R_VEC + 1:_R_VEC + 2, 0:D]
    be1 = p_ref[_R_VEC + 2:_R_VEC + 3, 0:D]
    b0 = p_ref[_R_VEC + 3:_R_VEC + 4, 0:D]
    g2 = p_ref[_R_VEC + 4:_R_VEC + 5, 0:D]
    be2 = p_ref[_R_VEC + 5:_R_VEC + 6, 0:D]
    b2 = p_ref[_R_VEC + 6:_R_VEC + 7, 0:D]
    b1 = p_ref[_R_VEC + 7:_R_VEC + 8, 0:DFF]

    def layer_norm(z, g, b):
        mu = jnp.mean(z, axis=-1, keepdims=True)
        var = jnp.mean((z - mu) ** 2, axis=-1, keepdims=True)
        return (z - mu) * lax.rsqrt(var + EPS) * g + b

    # ---- sublayer 1: pre-LN multi-head self-attention + residual ----
    x1 = layer_norm(x, g1, be1)
    # fused Q|K|V projection (1/sqrt(d_k) already folded into the Q columns/bias)
    qkv = jnp.dot(x1, wqkv, preferred_element_type=jnp.float32) + bqkv    # (B*L, 3D)

    # additive mask bias: 0 where kept, -1e9 where mask == 0 (same post-softmax result
    # as masked_fill(mask == 0, -1e9) for 0/1 masks)
    neg_bias = (mask_ref[...] - 1.0) * NEG_INF            # (B, L)

    # per-(batch, head) scores via A @ B^T dot_general (no explicit K transpose),
    # stacked along sublanes into one (B*H*L, L) slab so softmax is issued once.
    dn_nt = (((1,), (1,)), ((), ()))
    score_blocks = []
    for b in range(B):                                    # static tiny loop over batch
        r0 = b * L
        s_b = jnp.concatenate(
            [lax.dot_general(qkv[r0:r0 + L, h * DK:(h + 1) * DK],            # q_bh (L, DK)
                             qkv[r0:r0 + L, D + h * DK:D + (h + 1) * DK],    # k_bh (L, DK)
                             dn_nt, preferred_element_type=jnp.float32)
             for h in range(H)],
            axis=0)                                       # (H*L, L)
        score_blocks.append(s_b + neg_bias[b:b + 1, :])   # per-batch key mask, all heads/rows
    s = jnp.concatenate(score_blocks, axis=0)             # (B*H*L, L)

    # one fused softmax over the key axis for every (batch, head, query row)
    s = s - jnp.max(s, axis=-1, keepdims=True)
    e = jnp.exp(s)
    p = e * pl.reciprocal(jnp.sum(e, axis=-1, keepdims=True), approx=True)   # (B*H*L, L)

    # P@V per head, lane-concatenated to (L, D); then ONE (L,D)@(D,D) dot with w0 per batch
    attn_blocks = []
    for b in range(B):
        r0 = b * L
        ctx = jnp.concatenate(
            [jnp.dot(p[(b * H + h) * L:(b * H + h + 1) * L, :],              # (L, L)
                     qkv[r0:r0 + L, 2 * D + h * DK:2 * D + (h + 1) * DK],    # v_bh (L, DK)
                     preferred_element_type=jnp.float32)
             for h in range(H)],
            axis=1)                                       # (L, D)  head concat along lanes
        attn_blocks.append(jnp.dot(ctx, w0, preferred_element_type=jnp.float32))
    # residual 1 (dropout == identity); w_0 bias added once for the whole slab
    h1 = x + jnp.concatenate(attn_blocks, axis=0) + b0    # (B*L, D)

    # ---- sublayer 2: pre-LN feed-forward + residual ----
    x2 = layer_norm(h1, g2, be2)
    mid = jnp.maximum(jnp.dot(x2, w1, preferred_element_type=jnp.float32) + b1, 0.0)
    ff = jnp.dot(mid, w2, preferred_element_type=jnp.float32) + b2
    o_ref[...] = h1 + ff


def pack_params(params):
    """Build the (168, 96) parameter slab once (hoisted out of the per-call path).
    Folds the QKV concat and the 1/sqrt(d_k) score scaling into the Q weight/bias."""
    (g1, be1, wq, bq, wk, bk, wv, bv, w0, b0, g2, be2, w1, b1, w2, b2) = params
    scale = 1.0 / math.sqrt(DK)
    wqkv = jnp.concatenate([wq * scale, wk, wv], axis=1)   # (D, 3D)
    bqkv = jnp.concatenate([bq * scale, bk, bv], axis=1)   # (1, 3D)

    def pad(a):   # pad lanes to the slab width
        return jnp.pad(a, ((0, 0), (0, _PW - a.shape[1])))

    slab = jnp.concatenate(
        [wqkv, pad(w0), pad(w1), pad(w2),
         bqkv, pad(g1), pad(be1), pad(b0), pad(g2), pad(be2), pad(b2), pad(b1)],
        axis=0)
    assert slab.shape == (_N_ROWS, _PW)
    return slab


@jax.jit
def encoder_layer(x, e_mask, packed_params):
    x_flat = x.reshape(B * L, D)
    # Single grid step / full-array VMEM blocks: ~100 KiB total, fits every generation.
    # TODO(synk): at large B*L / D / DFF, add a batch grid axis (dimension_semantics=
    # ("parallel",)) + row-tiled BlockSpecs and bf16 matmul operands before scaling.
    out_flat = pl.pallas_call(
        encoder_layer_kernel,
        out_shape=jax.ShapeDtypeStruct((B * L, D), jnp.float32),
    )(x_flat, e_mask, packed_params)
    return out_flat.reshape(B, L, D)


# ---- pure-JAX reference for verification (mirrors the PyTorch module) ----
def encoder_layer_ref(x, e_mask, params):
    (g1, be1, wq, bq, wk, bk, wv, bv, w0, b0, g2, be2, w1, b1, w2, b2) = params

    def ln(z, g, b):
        mu = jnp.mean(z, axis=-1, keepdims=True)
        var = jnp.mean((z - mu) ** 2, axis=-1, keepdims=True)
        return (z - mu) / jnp.sqrt(var + EPS) * g + b

    x1 = ln(x, g1, be1)
    q = (x1 @ wq + bq).reshape(B, L, H, DK).transpose(0, 2, 1, 3)
    k = (x1 @ wk + bk).reshape(B, L, H, DK).transpose(0, 2, 1, 3)
    v = (x1 @ wv + bv).reshape(B, L, H, DK).transpose(0, 2, 1, 3)
    s = jnp.einsum("bhqd,bhkd->bhqk", q, k) / math.sqrt(DK)
    m = e_mask[:, None, None, :]  # (B,1,1,L)
    s = jnp.where(m == 0.0, -NEG_INF, s)
    p = jax.nn.softmax(s, axis=-1)
    av = jnp.einsum("bhqk,bhkd->bhqd", p, v).transpose(0, 2, 1, 3).reshape(B, L, D)
    x = x + (av @ w0 + b0)
    x2 = ln(x, g2, be2)
    ff = jnp.maximum(x2 @ w1 + b1, 0.0) @ w2 + b2
    return x + ff


if __name__ == "__main__":
    key = jax.random.PRNGKey(0)
    ks = jax.random.split(key, 12)

    x = jax.random.normal(ks[0], (B, L, D), dtype=jnp.float32)
    # mask: 1.0 = keep, 0.0 = masked (mask out last 2 key positions of batch 1)
    e_mask = jnp.ones((B, L), dtype=jnp.float32).at[1, -2:].set(0.0)

    def lin_init(k, fan_in, shape):
        bound = 1.0 / math.sqrt(fan_in)
        return jax.random.uniform(k, shape, jnp.float32, -bound, bound)

    g1 = jnp.ones((1, D), jnp.float32)
    be1 = jnp.zeros((1, D), jnp.float32)
    g2 = jnp.ones((1, D), jnp.float32)
    be2 = jnp.zeros((1, D), jnp.float32)
    wq = lin_init(ks[1], D, (D, D)); bq = lin_init(ks[2], D, (1, D))
    wk = lin_init(ks[3], D, (D, D)); bk = lin_init(ks[4], D, (1, D))
    wv = lin_init(ks[5], D, (D, D)); bv = lin_init(ks[6], D, (1, D))
    w0 = lin_init(ks[7], D, (D, D)); b0 = lin_init(ks[8], D, (1, D))
    w1 = lin_init(ks[9], D, (D, DFF)); b1 = lin_init(ks[10], D, (1, DFF))
    w2 = lin_init(ks[11], DFF, (DFF, D)); b2 = jnp.zeros((1, D), jnp.float32)

    params = (g1, be1, wq, bq, wk, bk, wv, bv, w0, b0, g2, be2, w1, b1, w2, b2)

    # Pack once (hoisted): the per-call path only sees x, e_mask and the packed slab.
    packed = jax.block_until_ready(pack_params(params))

    out = encoder_layer(x, e_mask, packed)
    out = jax.block_until_ready(out)

    ref = encoder_layer_ref(x, e_mask, params)
    assert out.shape == (B, L, D)
    # slightly loosened tolerance to cover pl.reciprocal(approx=True) in the softmax
    assert jnp.allclose(out, ref, rtol=2e-3, atol=2e-3), "mismatch vs reference"

    print("KERNEL_OK")
</pallas_src>

<mosaic_0001>
module attributes {stable_mosaic.version = 11 : i64} {
  func.func @encoder_layer_kernel(%arg0: memref<16x32xf32, #tpu.memory_space<vmem>>, %arg1: memref<2x8xf32, #tpu.memory_space<vmem>>, %arg2: memref<168x96xf32, #tpu.memory_space<vmem>>, %arg3: memref<16x32xf32, #tpu.memory_space<vmem>>) attributes {dimension_semantics = [], scalar_prefetch = 0 : i64, scratch_operands = 0 : i64, tpu.core_type = #tpu.core_type<tc>} {
    %c0 = arith.constant 0 : index
    %c0_0 = arith.constant 0 : index
    %0 = vector.load %arg0[%c0, %c0_0] : memref<16x32xf32, #tpu.memory_space<vmem>>, vector<16x32xf32>
    %c0_1 = arith.constant 0 : index
    %c0_2 = arith.constant 0 : index
    %1 = vector.load %arg2[%c0_1, %c0_2] : memref<168x96xf32, #tpu.memory_space<vmem>>, vector<32x96xf32>
    %c32 = arith.constant 32 : index
    %c0_3 = arith.constant 0 : index
    %2 = vector.load %arg2[%c32, %c0_3] : memref<168x96xf32, #tpu.memory_space<vmem>>, vector<32x32xf32>
    %c64 = arith.constant 64 : index
    %c0_4 = arith.constant 0 : index
    %3 = vector.load %arg2[%c64, %c0_4] : memref<168x96xf32, #tpu.memory_space<vmem>>, vector<32x64xf32>
    %c96 = arith.constant 96 : index
    %c0_5 = arith.constant 0 : index
    %4 = vector.load %arg2[%c96, %c0_5] : memref<168x96xf32, #tpu.memory_space<vmem>>, vector<64x32xf32>
    %c160 = arith.constant 160 : index
    %c0_6 = arith.constant 0 : index
    %5 = vector.load %arg2[%c160, %c0_6] : memref<168x96xf32, #tpu.memory_space<vmem>>, vector<1x96xf32>
    %c161 = arith.constant 161 : index
    %c0_7 = arith.constant 0 : index
    %6 = vector.load %arg2[%c161, %c0_7] : memref<168x96xf32, #tpu.memory_space<vmem>>, vector<1x32xf32>
    %c162 = arith.constant 162 : index
    %c0_8 = arith.constant 0 : index
    %7 = vector.load %arg2[%c162, %c0_8] : memref<168x96xf32, #tpu.memory_space<vmem>>, vector<1x32xf32>
    %c163 = arith.constant 163 : index
    %c0_9 = arith.constant 0 : index
    %8 = vector.load %arg2[%c163, %c0_9] : memref<168x96xf32, #tpu.memory_space<vmem>>, vector<1x32xf32>
    %c164 = arith.constant 164 : index
    %c0_10 = arith.constant 0 : index
    %9 = vector.load %arg2[%c164, %c0_10] : memref<168x96xf32, #tpu.memory_space<vmem>>, vector<1x32xf32>
    %c165 = arith.constant 165 : index
    %c0_11 = arith.constant 0 : index
    %10 = vector.load %arg2[%c165, %c0_11] : memref<168x96xf32, #tpu.memory_space<vmem>>, vector<1x32xf32>
    %c166 = arith.constant 166 : index
    %c0_12 = arith.constant 0 : index
    %11 = vector.load %arg2[%c166, %c0_12] : memref<168x96xf32, #tpu.memory_space<vmem>>, vector<1x32xf32>
    %c167 = arith.constant 167 : index
    %c0_13 = arith.constant 0 : index
    %12 = vector.load %arg2[%c167, %c0_13] : memref<168x96xf32, #tpu.memory_space<vmem>>, vector<1x64xf32>
    %cst = arith.constant dense<0.000000e+00> : vector<16xf32>
    %13 = vector.multi_reduction <add>, %0, %cst [1] : vector<16x32xf32> to vector<16xf32>
    %14 = vector.shape_cast %13 : vector<16xf32> to vector<16x1xf32>
    %cst_14 = arith.constant 3.200000e+01 : f32
    %15 = vector.broadcast %cst_14 : f32 to vector<16x1xf32>
    %16 = arith.divf %14, %15 : vector<16x1xf32>
    %17 = vector.broadcast %16 : vector<16x1xf32> to vector<16x32xf32>
    %18 = arith.subf %0, %17 : vector<16x32xf32>
    %19 = arith.mulf %18, %18 : vector<16x32xf32>
    %cst_15 = arith.constant dense<0.000000e+00> : vector<16xf32>
    %20 = vector.multi_reduction <add>, %19, %cst_15 [1] : vector<16x32xf32> to vector<16xf32>
    %21 = vector.shape_cast %20 : vector<16xf32> to vector<16x1xf32>
    %cst_16 = arith.constant 3.200000e+01 : f32
    %22 = vector.broadcast %cst_16 : f32 to vector<16x1xf32>
    %23 = arith.divf %21, %22 : vector<16x1xf32>
    %24 = vector.broadcast %16 : vector<16x1xf32> to vector<16x32xf32>
    %25 = arith.subf %0, %24 : vector<16x32xf32>
    %cst_17 = arith.constant 9.99999997E-7 : f32
    %26 = vector.broadcast %cst_17 : f32 to vector<16x1xf32>
    %27 = arith.addf %23, %26 : vector<16x1xf32>
    %28 = math.rsqrt %27 : vector<16x1xf32>
    %29 = vector.broadcast %28 : vector<16x1xf32> to vector<16x32xf32>
    %30 = arith.mulf %25, %29 : vector<16x32xf32>
    %31 = vector.broadcast %6 : vector<1x32xf32> to vector<16x32xf32>
    %32 = arith.mulf %30, %31 : vector<16x32xf32>
    %33 = vector.broadcast %7 : vector<1x32xf32> to vector<16x32xf32>
    %34 = arith.addf %32, %33 : vector<16x32xf32>
    %cst_18 = arith.constant dense<0.000000e+00> : vector<16x96xf32>
    %35 = tpu.matmul %34, %1, %cst_18 {dimension_numbers = #tpu.dot_dimension_numbers<[1], [0], [0], [1], [0, 0, 1, 1], [], []>} : vector<16x32xf32>, vector<32x96xf32>, vector<16x96xf32> -> vector<16x96xf32>
    %36 = vector.broadcast %5 : vector<1x96xf32> to vector<16x96xf32>
    %37 = arith.addf %35, %36 : vector<16x96xf32>
    %c0_19 = arith.constant 0 : index
    %c0_20 = arith.constant 0 : index
    %38 = vector.load %arg1[%c0_19, %c0_20] : memref<2x8xf32, #tpu.memory_space<vmem>>, vector<2x8xf32>
    %cst_21 = arith.constant 1.000000e+00 : f32
    %39 = vector.broadcast %cst_21 : f32 to vector<2x8xf32>
    %40 = arith.subf %38, %39 : vector<2x8xf32>
    %cst_22 = arith.constant 1.000000e+09 : f32
    %41 = vector.broadcast %cst_22 : f32 to vector<2x8xf32>
    %42 = arith.mulf %40, %41 : vector<2x8xf32>
    %43 = vector.extract_strided_slice %37 {offsets = [0, 0], sizes = [8, 8], strides = [1, 1]} : vector<16x96xf32> to vector<8x8xf32>
    %44 = vector.extract_strided_slice %37 {offsets = [0, 32], sizes = [8, 8], strides = [1, 1]} : vector<16x96xf32> to vector<8x8xf32>
    %cst_23 = arith.constant dense<0.000000e+00> : vector<8x8xf32>
    %45 = tpu.matmul %43, %44, %cst_23 {dimension_numbers = #tpu.dot_dimension_numbers<[1], [1], [0], [0], [0, 0, 1, 0], [], []>} : vector<8x8xf32>, vector<8x8xf32>, vector<8x8xf32> -> vector<8x8xf32>
    %46 = vector.extract_strided_slice %37 {offsets = [0, 8], sizes = [8, 8], strides = [1, 1]} : vector<16x96xf32> to vector<8x8xf32>
    %47 = vector.extract_strided_slice %37 {offsets = [0, 40], sizes = [8, 8], strides = [1, 1]} : vector<16x96xf32> to vector<8x8xf32>
    %cst_24 = arith.constant dense<0.000000e+00> : vector<8x8xf32>
    %48 = tpu.matmul %46, %47, %cst_24 {dimension_numbers = #tpu.dot_dimension_numbers<[1], [1], [0], [0], [0, 0, 1, 0], [], []>} : vector<8x8xf32>, vector<8x8xf32>, vector<8x8xf32> -> vector<8x8xf32>
    %49 = vector.extract_strided_slice %37 {offsets = [0, 16], sizes = [8, 8], strides = [1, 1]} : vector<16x96xf32> to vector<8x8xf32>
    %50 = vector.extract_strided_slice %37 {offsets = [0, 48], sizes = [8, 8], strides = [1, 1]} : vector<16x96xf32> to vector<8x8xf32>
    %cst_25 = arith.constant dense<0.000000e+00> : vector<8x8xf32>
    %51 = tpu.matmul %49, %50, %cst_25 {dimension_numbers = #tpu.dot_dimension_numbers<[1], [1], [0], [0], [0, 0, 1, 0], [], []>} : vector<8x8xf32>, vector<8x8xf32>, vector<8x8xf32> -> vector<8x8xf32>
    %52 = vector.extract_strided_slice %37 {offsets = [0, 24], sizes = [8, 8], strides = [1, 1]} : vector<16x96xf32> to vector<8x8xf32>
    %53 = vector.extract_strided_slice %37 {offsets = [0, 56], sizes = [8, 8], strides = [1, 1]} : vector<16x96xf32> to vector<8x8xf32>
    %cst_26 = arith.constant dense<0.000000e+00> : vector<8x8xf32>
    %54 = tpu.matmul %52, %53, %cst_26 {dimension_numbers = #tpu.dot_dimension_numbers<[1], [1], [0], [0], [0, 0, 1, 0], [], []>} : vector<8x8xf32>, vector<8x8xf32>, vector<8x8xf32> -> vector<8x8xf32>
    %55 = tpu.concatenate %45, %48, %51, %54 in 0 : vector<8x8xf32>, vector<8x8xf32>, vector<8x8xf32>, vector<8x8xf32> -> vector<32x8xf32>
    %56 = vector.extract_strided_slice %42 {offsets = [0, 0], sizes = [1, 8], strides = [1, 1]} : vector<2x8xf32> to vector<1x8xf32>
    %57 = vector.broadcast %56 : vector<1x8xf32> to vector<32x8xf32>
    %58 = arith.addf %55, %57 : vector<32x8xf32>
    %59 = vector.extract_strided_slice %37 {offsets = [8, 0], sizes = [8, 8], strides = [1, 1]} : vector<16x96xf32> to vector<8x8xf32>
    %60 = vector.extract_strided_slice %37 {offsets = [8, 32], sizes = [8, 8], strides = [1, 1]} : vector<16x96xf32> to vector<8x8xf32>
    %cst_27 = arith.constant dense<0.000000e+00> : vector<8x8xf32>
    %61 = tpu.matmul %59, %60, %cst_27 {dimension_numbers = #tpu.dot_dimension_numbers<[1], [1], [0], [0], [0, 0, 1, 0], [], []>} : vector<8x8xf32>, vector<8x8xf32>, vector<8x8xf32> -> vector<8x8xf32>
    %62 = vector.extract_strided_slice %37 {offsets = [8, 8], sizes = [8, 8], strides = [1, 1]} : vector<16x96xf32> to vector<8x8xf32>
    %63 = vector.extract_strided_slice %37 {offsets = [8, 40], sizes = [8, 8], strides = [1, 1]} : vector<16x96xf32> to vector<8x8xf32>
    %cst_28 = arith.constant dense<0.000000e+00> : vector<8x8xf32>
    %64 = tpu.matmul %62, %63, %cst_28 {dimension_numbers = #tpu.dot_dimension_numbers<[1], [1], [0], [0], [0, 0, 1, 0], [], []>} : vector<8x8xf32>, vector<8x8xf32>, vector<8x8xf32> -> vector<8x8xf32>
    %65 = vector.extract_strided_slice %37 {offsets = [8, 16], sizes = [8, 8], strides = [1, 1]} : vector<16x96xf32> to vector<8x8xf32>
    %66 = vector.extract_strided_slice %37 {offsets = [8, 48], sizes = [8, 8], strides = [1, 1]} : vector<16x96xf32> to vector<8x8xf32>
    %cst_29 = arith.constant dense<0.000000e+00> : vector<8x8xf32>
    %67 = tpu.matmul %65, %66, %cst_29 {dimension_numbers = #tpu.dot_dimension_numbers<[1], [1], [0], [0], [0, 0, 1, 0], [], []>} : vector<8x8xf32>, vector<8x8xf32>, vector<8x8xf32> -> vector<8x8xf32>
    %68 = vector.extract_strided_slice %37 {offsets = [8, 24], sizes = [8, 8], strides = [1, 1]} : vector<16x96xf32> to vector<8x8xf32>
    %69 = vector.extract_strided_slice %37 {offsets = [8, 56], sizes = [8, 8], strides = [1, 1]} : vector<16x96xf32> to vector<8x8xf32>
    %cst_30 = arith.constant dense<0.000000e+00> : vector<8x8xf32>
    %70 = tpu.matmul %68, %69, %cst_30 {dimension_numbers = #tpu.dot_dimension_numbers<[1], [1], [0], [0], [0, 0, 1, 0], [], []>} : vector<8x8xf32>, vector<8x8xf32>, vector<8x8xf32> -> vector<8x8xf32>
    %71 = tpu.concatenate %61, %64, %67, %70 in 0 : vector<8x8xf32>, vector<8x8xf32>, vector<8x8xf32>, vector<8x8xf32> -> vector<32x8xf32>
    %72 = vector.extract_strided_slice %42 {offsets = [1, 0], sizes = [1, 8], strides = [1, 1]} : vector<2x8xf32> to vector<1x8xf32>
    %73 = vector.broadcast %72 : vector<1x8xf32> to vector<32x8xf32>
    %74 = arith.addf %71, %73 : vector<32x8xf32>
    %75 = tpu.concatenate %58, %74 in 0 : vector<32x8xf32>, vector<32x8xf32> -> vector<64x8xf32>
    %cst_31 = arith.constant dense<0xFF800000> : vector<64xf32>
    %76 = vector.multi_reduction <maximumf>, %75, %cst_31 [1] : vector<64x8xf32> to vector<64xf32>
    %77 = vector.shape_cast %76 : vector<64xf32> to vector<64x1xf32>
    %78 = vector.broadcast %77 : vector<64x1xf32> to vector<64x8xf32>
    %79 = arith.subf %75, %78 : vector<64x8xf32>
    %80 = math.exp %79 : vector<64x8xf32>
    %cst_32 = arith.constant dense<0.000000e+00> : vector<64xf32>
    %81 = vector.multi_reduction <add>, %80, %cst_32 [1] : vector<64x8xf32> to vector<64xf32>
    %82 = vector.shape_cast %81 : vector<64xf32> to vector<64x1xf32>
    %83 = tpu.reciprocal %82 {approx = true} : vector<64x1xf32> -> vector<64x1xf32>
    %84 = vector.broadcast %83 : vector<64x1xf32> to vector<64x8xf32>
    %85 = arith.mulf %80, %84 : vector<64x8xf32>
    %86 = vector.extract_strided_slice %85 {offsets = [0, 0], sizes = [8, 8], strides = [1, 1]} : vector<64x8xf32> to vector<8x8xf32>
    %87 = vector.extract_strided_slice %37 {offsets = [0, 64], sizes = [8, 8], strides = [1, 1]} : vector<16x96xf32> to vector<8x8xf32>
    %cst_33 = arith.constant dense<0.000000e+00> : vector<8x8xf32>
    %88 = tpu.matmul %86, %87, %cst_33 {dimension_numbers = #tpu.dot_dimension_numbers<[1], [0], [0], [1], [0, 0, 1, 1], [], []>} : vector<8x8xf32>, vector<8x8xf32>, vector<8x8xf32> -> vector<8x8xf32>
    %89 = vector.extract_strided_slice %85 {offsets = [8, 0], sizes = [8, 8], strides = [1, 1]} : vector<64x8xf32> to vector<8x8xf32>
    %90 = vector.extract_strided_slice %37 {offsets = [0, 72], sizes = [8, 8], strides = [1, 1]} : vector<16x96xf32> to vector<8x8xf32>
    %cst_34 = arith.constant dense<0.000000e+00> : vector<8x8xf32>
    %91 = tpu.matmul %89, %90, %cst_34 {dimension_numbers = #tpu.dot_dimension_numbers<[1], [0], [0], [1], [0, 0, 1, 1], [], []>} : vector<8x8xf32>, vector<8x8xf32>, vector<8x8xf32> -> vector<8x8xf32>
    %92 = vector.extract_strided_slice %85 {offsets = [16, 0], sizes = [8, 8], strides = [1, 1]} : vector<64x8xf32> to vector<8x8xf32>
    %93 = vector.extract_strided_slice %37 {offsets = [0, 80], sizes = [8, 8], strides = [1, 1]} : vector<16x96xf32> to vector<8x8xf32>
    %cst_35 = arith.constant dense<0.000000e+00> : vector<8x8xf32>
    %94 = tpu.matmul %92, %93, %cst_35 {dimension_numbers = #tpu.dot_dimension_numbers<[1], [0], [0], [1], [0, 0, 1, 1], [], []>} : vector<8x8xf32>, vector<8x8xf32>, vector<8x8xf32> -> vector<8x8xf32>
    %95 = vector.extract_strided_slice %85 {offsets = [24, 0], sizes = [8, 8], strides = [1, 1]} : vector<64x8xf32> to vector<8x8xf32>
    %96 = vector.extract_strided_slice %37 {offsets = [0, 88], sizes = [8, 8], strides = [1, 1]} : vector<16x96xf32> to vector<8x8xf32>
    %cst_36 = arith.constant dense<0.000000e+00> : vector<8x8xf32>
    %97 = tpu.matmul %95, %96, %cst_36 {dimension_numbers = #tpu.dot_dimension_numbers<[1], [0], [0], [1], [0, 0, 1, 1], [], []>} : vector<8x8xf32>, vector<8x8xf32>, vector<8x8xf32> -> vector<8x8xf32>
    %98 = tpu.concatenate %88, %91, %94, %97 in 1 : vector<8x8xf32>, vector<8x8xf32>, vector<8x8xf32>, vector<8x8xf32> -> vector<8x32xf32>
    %cst_37 = arith.constant dense<0.000000e+00> : vector<8x32xf32>
    %99 = tpu.matmul %98, %2, %cst_37 {dimension_numbers = #tpu.dot_dimension_numbers<[1], [0], [0], [1], [0, 0, 1, 1], [], []>} : vector<8x32xf32>, vector<32x32xf32>, vector<8x32xf32> -> vector<8x32xf32>
    %100 = vector.extract_strided_slice %85 {offsets = [32, 0], sizes = [8, 8], strides = [1, 1]} : vector<64x8xf32> to vector<8x8xf32>
    %101 = vector.extract_strided_slice %37 {offsets = [8, 64], sizes = [8, 8], strides = [1, 1]} : vector<16x96xf32> to vector<8x8xf32>
    %cst_38 = arith.constant dense<0.000000e+00> : vector<8x8xf32>
    %102 = tpu.matmul %100, %101, %cst_38 {dimension_numbers = #tpu.dot_dimension_numbers<[1], [0], [0], [1], [0, 0, 1, 1], [], []>} : vector<8x8xf32>, vector<8x8xf32>, vector<8x8xf32> -> vector<8x8xf32>
    %103 = vector.extract_strided_slice %85 {offsets = [40, 0], sizes = [8, 8], strides = [1, 1]} : vector<64x8xf32> to vector<8x8xf32>
    %104 = vector.extract_strided_slice %37 {offsets = [8, 72], sizes = [8, 8], strides = [1, 1]} : vector<16x96xf32> to vector<8x8xf32>
    %cst_39 = arith.constant dense<0.000000e+00> : vector<8x8xf32>
    %105 = tpu.matmul %103, %104, %cst_39 {dimension_numbers = #tpu.dot_dimension_numbers<[1], [0], [0], [1], [0, 0, 1, 1], [], []>} : vector<8x8xf32>, vector<8x8xf32>, vector<8x8xf32> -> vector<8x8xf32>
    %106 = vector.extract_strided_slice %85 {offsets = [48, 0], sizes = [8, 8], strides = [1, 1]} : vector<64x8xf32> to vector<8x8xf32>
    %107 = vector.extract_strided_slice %37 {offsets = [8, 80], sizes = [8, 8], strides = [1, 1]} : vector<16x96xf32> to vector<8x8xf32>
    %cst_40 = arith.constant dense<0.000000e+00> : vector<8x8xf32>
    %108 = tpu.matmul %106, %107, %cst_40 {dimension_numbers = #tpu.dot_dimension_numbers<[1], [0], [0], [1], [0, 0, 1, 1], [], []>} : vector<8x8xf32>, vector<8x8xf32>, vector<8x8xf32> -> vector<8x8xf32>
    %109 = vector.extract_strided_slice %85 {offsets = [56, 0], sizes = [8, 8], strides = [1, 1]} : vector<64x8xf32> to vector<8x8xf32>
    %110 = vector.extract_strided_slice %37 {offsets = [8, 88], sizes = [8, 8], strides = [1, 1]} : vector<16x96xf32> to vector<8x8xf32>
    %cst_41 = arith.constant dense<0.000000e+00> : vector<8x8xf32>
    %111 = tpu.matmul %109, %110, %cst_41 {dimension_numbers = #tpu.dot_dimension_numbers<[1], [0], [0], [1], [0, 0, 1, 1], [], []>} : vector<8x8xf32>, vector<8x8xf32>, vector<8x8xf32> -> vector<8x8xf32>
    %112 = tpu.concatenate %102, %105, %108, %111 in 1 : vector<8x8xf32>, vector<8x8xf32>, vector<8x8xf32>, vector<8x8xf32> -> vector<8x32xf32>
    %cst_42 = arith.constant dense<0.000000e+00> : vector<8x32xf32>
    %113 = tpu.matmul %112, %2, %cst_42 {dimension_numbers = #tpu.dot_dimension_numbers<[1], [0], [0], [1], [0, 0, 1, 1], [], []>} : vector<8x32xf32>, vector<32x32xf32>, vector<8x32xf32> -> vector<8x32xf32>
    %114 = tpu.concatenate %99, %113 in 0 : vector<8x32xf32>, vector<8x32xf32> -> vector<16x32xf32>
    %115 = arith.addf %0, %114 : vector<16x32xf32>
    %116 = vector.broadcast %8 : vector<1x32xf32> to vector<16x32xf32>
    %117 = arith.addf %115, %116 : vector<16x32xf32>
    %cst_43 = arith.constant dense<0.000000e+00> : vector<16xf32>
    %118 = vector.multi_reduction <add>, %117, %cst_43 [1] : vector<16x32xf32> to vector<16xf32>
    %119 = vector.shape_cast %118 : vector<16xf32> to vector<16x1xf32>
    %cst_44 = arith.constant 3.200000e+01 : f32
    %120 = vector.broadcast %cst_44 : f32 to vector<16x1xf32>
    %121 = arith.divf %119, %120 : vector<16x1xf32>
    %122 = vector.broadcast %121 : vector<16x1xf32> to vector<16x32xf32>
    %123 = arith.subf %117, %122 : vector<16x32xf32>
    %124 = arith.mulf %123, %123 : vector<16x32xf32>
    %cst_45 = arith.constant dense<0.000000e+00> : vector<16xf32>
    %125 = vector.multi_reduction <add>, %124, %cst_45 [1] : vector<16x32xf32> to vector<16xf32>
    %126 = vector.shape_cast %125 : vector<16xf32> to vector<16x1xf32>
    %cst_46 = arith.constant 3.200000e+01 : f32
    %127 = vector.broadcast %cst_46 : f32 to vector<16x1xf32>
    %128 = arith.divf %126, %127 : vector<16x1xf32>
    %129 = vector.broadcast %121 : vector<16x1xf32> to vector<16x32xf32>
    %130 = arith.subf %117, %129 : vector<16x32xf32>
    %cst_47 = arith.constant 9.99999997E-7 : f32
    %131 = vector.broadcast %cst_47 : f32 to vector<16x1xf32>
    %132 = arith.addf %128, %131 : vector<16x1xf32>
    %133 = math.rsqrt %132 : vector<16x1xf32>
    %134 = vector.broadcast %133 : vector<16x1xf32> to vector<16x32xf32>
    %135 = arith.mulf %130, %134 : vector<16x32xf32>
    %136 = vector.broadcast %9 : vector<1x32xf32> to vector<16x32xf32>
    %137 = arith.mulf %135, %136 : vector<16x32xf32>
    %138 = vector.broadcast %10 : vector<1x32xf32> to vector<16x32xf32>
    %139 = arith.addf %137, %138 : vector<16x32xf32>
    %cst_48 = arith.constant dense<0.000000e+00> : vector<16x64xf32>
    %140 = tpu.matmul %139, %3, %cst_48 {dimension_numbers = #tpu.dot_dimension_numbers<[1], [0], [0], [1], [0, 0, 1, 1], [], []>} : vector<16x32xf32>, vector<32x64xf32>, vector<16x64xf32> -> vector<16x64xf32>
    %141 = vector.broadcast %12 : vector<1x64xf32> to vector<16x64xf32>
    %142 = arith.addf %140, %141 : vector<16x64xf32>
    %cst_49 = arith.constant 0.000000e+00 : f32
    %143 = vector.broadcast %cst_49 : f32 to vector<16x64xf32>
    %144 = arith.maximumf %142, %143 : vector<16x64xf32>
    %cst_50 = arith.constant dense<0.000000e+00> : vector<16x32xf32>
    %145 = tpu.matmul %144, %4, %cst_50 {dimension_numbers = #tpu.dot_dimension_numbers<[1], [0], [0], [1], [0, 0, 1, 1], [], []>} : vector<16x64xf32>, vector<64x32xf32>, vector<16x32xf32> -> vector<16x32xf32>
    %146 = vector.broadcast %11 : vector<1x32xf32> to vector<16x32xf32>
    %147 = arith.addf %145, %146 : vector<16x32xf32>
    %148 = arith.addf %117, %147 : vector<16x32xf32>
    %c0_51 = arith.constant 0 : index
    %c0_52 = arith.constant 0 : index
    %149 = vector.load %arg3[%c0_51, %c0_52] : memref<16x32xf32, #tpu.memory_space<vmem>>, vector<16x32xf32>
    tpu.vector_store %arg3[%c0_51, %c0_52], %148 {strides = array<i32>} : memref<16x32xf32, #tpu.memory_space<vmem>>, vector<16x32xf32>,
    return
  }
}

</mosaic_0001>

<bundles_post_ra>
// kernel: encoder_layer.1
= control target key start
LH: loop header
LB: loop body
LE: loop exit
PB: predicated region body
PF: predicated region fallthrough
CT: control target
= control target key end

     0   :  { %8 = vsyncpa [#allocation3], 0  ;;  %s2659_s0 = inlined_call_operand.hbm [shape: f32[16,32], index: 0, kind: input, shape index: {}]   ;;  %s2660_s1 = inlined_call_operand.vmem [shape: f32[2,8], index: 1, kind: input, shape index: {}]   ;;  %s2661_s2 = inlined_call_operand.hbm [shape: f32[168,96], index: 2, kind: input, shape index: {}]   ;;  %s2662_s3 = inlined_call_operand.hbm [shape: f32[16,32], index: 3, kind: output, shape index: {}]  }
   0x1   :  { %9 = vsyncpa [#allocation6], 0 }
   0x2   :  { %10 = vsyncpa [#allocation4], 0  ;;  %s2380_s12 = smov [#allocation2]   ;;  %s2308_s16 = scalar_lea.hbm %s2659_s0, 256 }
   0x3   :  { %s16_s13 = sshll.u32 %s2380_s12, 4  ;;  %p2309_p0 = scmp.ne.s32.totalorder %s2659_s0, %s2308_s16  ;;  %s17_s13 = int_to_ptr.vmem [resolvable:$true] %s16_s13 }
   0x4   :  { %p2312_p1 = scmp.lt.u32.totalorder %s2308_s16, %s2659_s0 }
   0x6   :  { %p2314_p2 = pnand %p2312_p1, %p2309_p0 }
   0x8   :  { %2317 = shalt.err (!%p2314_p2)
}
   0x9   :  { %s2318_s21 = scalar_lea.vmem %s17_s13, 256  ;;  %p2323_p4 = scmp.lt.s32.totalorder %s17_s13, %s17_s13 }
   0xa   :  { %p2319_p3 = scmp.ne.s32.totalorder %s17_s13, %s2318_s21  ;;  %p2324_p5 = scmp.lt.s32.totalorder %s2318_s21, %s2318_s21 }
   0xc   :  { %p2325_p6 = por %p2324_p5, %p2323_p4 }
   0xe   :  { %p2326_p7 = pnand %p2325_p6, %p2319_p3 }
  0x10   :  { %2329 = shalt.err (!%p2326_p7)
}
  0x11   :  { %s2381_s22 = smov 128   ;;  %s2382_s23 = smov 8  }
  0x12   :  { %22 = dma.hbm_to_vmem [thread:$0]  %s2659_s0, 256, %s17_s13, [#allocation3], %s2381_s22, %s2381_s22, %s2382_s23  }
  0x13   :  { %s2383_s26 = smov [#allocation5]   ;;  %s2330_s30 = scalar_lea.hbm %s2661_s2, 2688 }
  0x14   :  { %s30_s27 = sshll.u32 %s2383_s26, 4  ;;  %p2331_p8 = scmp.ne.s32.totalorder %s2661_s2, %s2330_s30  ;;  %s31_s27 = int_to_ptr.vmem [resolvable:$true] %s30_s27 }
  0x15   :  { %p2334_p9 = scmp.lt.u32.totalorder %s2330_s30, %s2661_s2 }
  0x17   :  { %p2336_p10 = pnand %p2334_p9, %p2331_p8 }
  0x19   :  { %2339 = shalt.err (!%p2336_p10)
}
  0x1a   :  { %s2340_s8 = scalar_lea.vmem %s31_s27, 2688  ;;  %p2345_p12 = scmp.lt.s32.totalorder %s31_s27, %s31_s27 }
  0x1b   :  { %p2341_p11 = scmp.ne.s32.totalorder %s31_s27, %s2340_s8  ;;  %p2346_p13 = scmp.lt.s32.totalorder %s2340_s8, %s2340_s8 }
  0x1d   :  { %p2347_p0 = por %p2346_p13, %p2345_p12 }
  0x1f   :  { %p2348_p1 = pnand %p2347_p0, %p2341_p11 }
  0x21   :  { %2351 = shalt.err (!%p2348_p1)
}
  0x22   :  { %36 = dma.hbm_to_vmem [thread:$0]  %s2661_s2, 2688, %s31_s27, [#allocation6], %s2381_s22, %s2381_s22, %s2382_s23  }
  0x23   :  { %2374 = dma.done.wait [#allocation3], 256  }
  0x24   :  { %2375 = vsyncadd [#allocation3], 4294967040 }
  0x25   :  { %2376 = dma.done.wait [#allocation6], 2688  }
  0x26   :  { %2377 = vsyncadd [#allocation6], 4294964608  ;;  %vm73_vm0 = vcmask 261120   ;;  %v2451_v0 = vld [vmem:[#allocation2] sm:$0xff]  ;;  %v2453_v1 = vld [vmem:[#allocation2 + $0x8] sm:$0xff]  ;;  %v2384_v36 = vmov 0.0   ;;  %v513_v55 = vlaneseq }
  0x27   :  { %v74_v2 = vsel %vm73_vm0, %v2451_v0, 0.0  ;;  %v77_v3 = vsel %vm73_vm0, %v2453_v1, 0.0  ;;  %v45_v14 = vld [vmem:[#allocation5] sm:$0xff]  ;;  %v46_v15 = vld [vmem:[#allocation5 + $0x8] sm:$0xff]  ;;  %v47_v16 = vld [vmem:[#allocation5 + $0x10] sm:$0xff]  ;;  %2081 = vmatprep.subr.mxu0 %v2384_v36  ;;  %vm2385_vm1 = vmmov 0  }
  0x28   :  { %75 = vadd.xlane.f32.xlu0 %v74_v2  ;;  %v2203_v17 = vpack.c.bf16 %v46_v15, %v45_v14  ;;  %v48_v18 = vld [vmem:[#allocation5 + $0x18] sm:$0xff]  ;;  %v1955_v27 = vld [vmem:[#allocation5 + $0xa1] ss:$0 sm:$0xff]  ;;  %v1956_v29 = vld [vmem:[#allocation5 + $0xa2] ss:$0 sm:$0xff]  ;;  %2083 = vmatprep.mubr.msk.f32.mxu0 %vm2385_vm1, %v2384_v36  ;;  %s2386_s2 = smov 88  }
  0x29   :  { %v2207_v19 = vpack.c.bf16 %v48_v18, %v47_v16  ;;  %v1957_v37 = vld [vmem:[#allocation5 + $0xa0] ss:$0 sm:$0xff]  ;;  %s2387_s10 = smov 96   ;;  %s2388_s11 = smov 120   ;;  %vm204_vm2 = vcmask 64512   ;;  %v514_v57 = vshrl.u32 %v513_v55, 7 }
  0x2a   :  { %2204 = vmatprep.subr.bf16.mxu1 %v2203_v17  ;;  %s2389_s12 = smov 72   ;;  %s2390_s13 = smov 80   ;;  %v198_v54 = vld [vmem:[%s2660_s1] sm:$0x3]  ;;  %vm1245_vm3 = vcmask 130048   ;;  %vm1247_vm4 = vcmask 195584  }
  0x2b   :  { %2206 = vmatpush3.bf16.msra.mxu1 %v2203_v17  ;;  %s2391_s14 = smov 104   ;;  %s2392_s15 = smov 112   ;;  %v1960_v56 = vadd.f32 -1.0, %v198_v54  ;;  %v834_v59 = vsub.s32 1, %v514_v57  ;;  %v515_v61 = vsub.s32 0, %v514_v57  ;;  %vm1851_vm5 = vcmask 523264  }
  0x2c   :  { %78 = vadd.xlane.f32.xlu0 %v77_v3  ;;  %2208 = vmatprep.subr.bf16.mxu1 %v2207_v19  ;;  %s2393_s1 = smov 56   ;;  %s2394_s18 = smov 64  }
  0x2d   :  { %v200_v58 = vmul.f32 1e+09, %v1960_v56  ;;  %s2395_s19 = smov 40   ;;  %s2396_s20 = smov 48  }
  0x2e   :  { %s2398_s21 = smov 16   ;;  %s2399_s24 = smov 24  }
  0x2f   :  { %2210 = vmatpush3.bf16.msra.mxu1 %v2207_v19  ;;  %v2528_v60 = vrot.slane %v200_v58, %v834_v59  ;;  %v516_v62 = vrot.slane %v200_v58, %v515_v61  ;;  %s2400_s25 = smov [#allocation7]  }
  0x30   :  { %2071 = vmatprep.subr.mxu1 %v2384_v36  ;;  %s1942_s26 = sshll.u32 %s2400_s25, 4  ;;  %s1943_s26 = int_to_ptr.vmem [resolvable:$true] %s1942_s26 }
  0x31   :  { %s2352_s27 = scalar_lea.vmem %s1943_s26, 256  ;;  %p2357_p3 = scmp.lt.s32.totalorder %s1943_s26, %s1943_s26 }
  0x32   :  { %p2353_p2 = scmp.ne.s32.totalorder %s1943_s26, %s2352_s27  ;;  %p2358_p4 = scmp.lt.s32.totalorder %s2352_s27, %s2352_s27 }
  0x34   :  { %p2359_p5 = por %p2358_p4, %p2357_p3 }
  0x36   :  { %p2360_p6 = pnand %p2359_p5, %p2353_p2 }
  0xb5   :  { %v76_v4 = vpop.xlane.xlu0 %75 }
  0xb6   :  { %v81_v5 = vmul.f32 0.03125, %v76_v4 }
  0xb8   :  { %v83_v6 = vsub.f32 %v2451_v0, %v81_v5 }
  0xb9   :  { %v79_v7 = vpop.xlane.xlu0 %78 }
  0xba   :  { %v82_v8 = vmul.f32 0.03125, %v79_v7  ;;  %v85_v9 = vmul.f32 %v83_v6, %v83_v6 }
  0xbc   :  { %v84_v10 = vsub.f32 %v2453_v1, %v82_v8  ;;  %v87_v11 = vsel %vm73_vm0, %v85_v9, 0.0 }
  0xbd   :  { %88 = vadd.xlane.f32.xlu1 %v87_v11 }
  0xbe   :  { %v86_v12 = vmul.f32 %v84_v10, %v84_v10 }
  0xc0   :  { %v90_v13 = vsel %vm73_vm0, %v86_v12, 0.0 }
  0xc1   :  { %91 = vadd.xlane.f32.xlu1 %v90_v13 }
 0x14a   :  { %v89_v20 = vpop.xlane.xlu1 %88 }
 0x14b   :  { %v93_v21 = vmul.f32 0.03125, %v89_v20 }
 0x14d   :  { %v95_v22 = vadd.f32 1e-06, %v93_v21 }
 0x14e   :  { %v92_v23 = vpop.xlane.xlu1 %91 }
 0x14f   :  { %2268 = vrsqrt.f32 %v95_v22  ;;  %v94_v24 = vmul.f32 0.03125, %v92_v23 }
 0x151   :  { %v96_v25 = vadd.f32 1e-06, %v94_v24 }
 0x153   :  { %2270 = vrsqrt.f32 %v96_v25 }
 0x159   :  { %v2269_v26 = vpop.eup %2268 }
 0x15a   :  { %v99_v28 = vmul.f32 %v2269_v26, %v83_v6 }
 0x15c   :  { %v105_v30 = vmul.f32 %v1955_v27, %v99_v28 }
 0x15d   :  { %v2271_v31 = vpop.eup %2270 }
 0x15e   :  { %v100_v32 = vmul.f32 %v2271_v31, %v84_v10  ;;  %v111_v33 = vadd.f32 %v1956_v29, %v105_v30 }
 0x160   :  { %v106_v34 = vmul.f32 %v1955_v27, %v100_v32  ;;  %2068 = vmatprep.mubr.msk.f32.mxu1 %vm73_vm0, %v111_v33 }
 0x162   :  { %v112_v35 = vadd.f32 %v1956_v29, %v106_v34 }
 0x164   :  { %2069 = vmatmul.mubr.msk.f32.vlgmr.msra.gmra.mrb[0].mxu1 %vm73_vm0, %v112_v35 }
 0x165   :  { %2073 = vmatprep.mubr.msk.f32.mxu1 %vm2385_vm1, %v2384_v36 }
 0x237   :  { %v2070_v38 = vpop.f32.mrb[0].mxu1 }
 0x238   :  { %v189_v39 = vpop.f32.mrb[1].mxu1  ;;  %v2480_v41 = vadd.f32 %v2070_v38, %v1957_v37 }
 0x239   :  { %v2471_v40 = vadd.f32 %v1957_v37, %v189_v39 }
 0x23b   :  { %281 = vrot.lane.b32.xlu1 %v2471_v40, %s2386_s2  ;;  %202 = vrot.lane.b32.xlu0 %v2471_v40, %s2387_s10 }
 0x23f   :  { %279 = vrot.lane.b32.xlu1 %v2471_v40, %s2388_s11  ;;  %437 = vrot.lane.b32.xlu0 %v2471_v40, %s2389_s12 }
 0x243   :  { %359 = vrot.lane.b32.xlu1 %v2471_v40, %s2390_s13  ;;  %435 = vrot.lane.b32.xlu0 %v2471_v40, %s2391_s14 }
 0x247   :  { %357 = vrot.lane.b32.xlu1 %v2471_v40, %s2392_s15  ;;  %598 = vrot.lane.b32.xlu0 %v2480_v41, %s2388_s11 }
 0x24b   :  { %522 = vrot.lane.b32.xlu1 %v2480_v41, %s2387_s10 }
 0x24f   :  { %600 = vrot.lane.b32.xlu1 %v2480_v41, %s2386_s2 }
 0x253   :  { %678 = vrot.lane.b32.xlu1 %v2480_v41, %s2390_s13 }
 0x257   :  { %756 = vrot.lane.b32.xlu1 %v2480_v41, %s2389_s12 }
 0x2ad   :  { %v282_v42 = vpop.permute.xlu1 %281  ;;  %v203_v43 = vpop.permute.xlu0 %202 }
 0x2ae   :  { %2072 = vmatpush3.xpose.msk.msra.mxu1 %vm204_vm2, %v203_v43 }
 0x2af   :  { %2076 = vmatprep.subr.mxu1 %v2384_v36 }
 0x2b1   :  { %v280_v44 = vpop.permute.xlu1 %279  ;;  %2074 = vmatmul.mubr.msk.f32.vlgmr.msra.gmra.mrb[2].mxu1 %vm204_vm2, %v2471_v40  ;;  %v438_v45 = vpop.permute.xlu0 %437 }
 0x2b2   :  { %2077 = vmatpush3.xpose.msk.msra.mxu1 %vm204_vm2, %v282_v42  ;;  %2078 = vmatprep.mubr.msk.f32.mxu1 %vm2385_vm1, %v2384_v36 }
 0x2b3   :  { %2086 = vmatprep.subr.mxu1 %v2384_v36 }
 0x2b5   :  { %v360_v46 = vpop.permute.xlu1 %359  ;;  %2079 = vmatmul.mubr.msk.f32.vlgmr.msra.gmra.mrb[4].mxu1 %vm204_vm2, %v280_v44  ;;  %v436_v47 = vpop.permute.xlu0 %435 }
 0x2b6   :  { %2082 = vmatpush3.xpose.msk.msra.mxu0 %vm204_vm2, %v360_v46  ;;  %2087 = vmatpush3.xpose.msk.msra.mxu1 %vm204_vm2, %v438_v45 }
 0x2b7   :  { %2088 = vmatprep.mubr.msk.f32.mxu1 %vm2385_vm1, %v2384_v36  ;;  %2091 = vmatprep.subr.mxu0 %v2384_v36 }
 0x2b8   :  { %2096 = vmatprep.subr.mxu1 %v2384_v36 }
 0x2b9   :  { %v358_v48 = vpop.permute.xlu1 %357  ;;  %2089 = vmatmul.mubr.msk.f32.vlgmr.msra.gmra.mrb[6].mxu1 %vm204_vm2, %v436_v47  ;;  %v599_v51 = vpop.permute.xlu0 %598 }
 0x2ba   :  { %2084 = vmatmul.mubr.msk.f32.vlgmr.msra.gmra.mrb[0].mxu0 %vm204_vm2, %v358_v48  ;;  %2098 = vmatprep.mubr.msk.f32.mxu1 %vm2385_vm1, %v2384_v36 }
 0x2bb   :  { %2093 = vmatprep.mubr.msk.f32.mxu0 %vm2385_vm1, %v2384_v36 }
 0x2bd   :  { %v523_v49 = vpop.permute.xlu1 %522 }
 0x2be   :  { %2092 = vmatpush3.xpose.msk.msra.mxu0 %vm204_vm2, %v523_v49 }
 0x2bf   :  { %2101 = vmatprep.subr.mxu0 %v2384_v36 }
 0x2c1   :  { %2094 = vmatmul.mubr.msk.f32.vlgmr.msra.gmra.mrb[2].mxu0 %vm204_vm2, %v2480_v41  ;;  %v601_v50 = vpop.permute.xlu1 %600 }
 0x2c2   :  { %2097 = vmatpush3.xpose.msk.msra.mxu1 %vm204_vm2, %v601_v50  ;;  %2103 = vmatprep.mubr.msk.f32.mxu0 %vm2385_vm1, %v2384_v36 }
 0x2c3   :  { %2106 = vmatprep.subr.mxu1 %v2384_v36 }
 0x2c5   :  { %v679_v52 = vpop.permute.xlu1 %678  ;;  %2099 = vmatmul.mubr.msk.f32.vlgmr.msra.gmra.mrb[8].mxu1 %vm204_vm2, %v599_v51 }
 0x2c6   :  { %2102 = vmatpush3.xpose.msk.msra.mxu0 %vm204_vm2, %v679_v52  ;;  %2108 = vmatprep.mubr.msk.f32.mxu1 %vm2385_vm1, %v2384_v36 }
 0x2c7   :  { %2111 = vmatprep.subr.mxu0 %v2384_v36 }
 0x2c9   :  { %v757_v53 = vpop.permute.xlu1 %756 }
 0x2ca   :  { %2107 = vmatpush3.xpose.msk.msra.mxu1 %vm204_vm2, %v757_v53 }
 0x2cb   :  { %2116 = vmatprep.subr.mxu1 %v2384_v36 }
 0x384   :  { %v275_v63 = vpop.f32.mrb[2].mxu1 }
 0x385   :  { %v517_v2 = vadd.f32 %v516_v62, %v275_v63  ;;  %v2075_v3 = vpop.f32.mrb[3].mxu1 }
 0x387   :  { %v840_v4 = vsel %vm204_vm2, %v517_v2, -inf }
 0x388   :  { %841 = vmax.xlane.f32.xlu0 %v840_v4  ;;  %v353_v5 = vpop.f32.mrb[4].mxu1 }
 0x389   :  { %v518_v6 = vadd.f32 %v516_v62, %v353_v5  ;;  %v2080_v7 = vpop.f32.mrb[5].mxu1 }
 0x38b   :  { %v843_v8 = vsel %vm204_vm2, %v518_v6, -inf }
 0x38c   :  { %844 = vmax.xlane.f32.xlu1 %v843_v8  ;;  %v509_v9 = vpop.f32.mrb[6].mxu1 }
 0x38d   :  { %v520_v10 = vadd.f32 %v516_v62, %v509_v9  ;;  %v431_v11 = vpop.f32.mrb[0].mxu0  ;;  %v2090_v12 = vpop.f32.mrb[7].mxu1 }
 0x38e   :  { %v519_v13 = vadd.f32 %v516_v62, %v431_v11  ;;  %v2085_v14 = vpop.f32.mrb[1].mxu0 }
 0x38f   :  { %v849_v15 = vsel %vm204_vm2, %v520_v10, -inf }
 0x390   :  { %850 = vmax.xlane.f32.xlu1 %v849_v15  ;;  %v846_v16 = vsel %vm204_vm2, %v519_v13, -inf }
 0x391   :  { %847 = vmax.xlane.f32.xlu0 %v846_v16 }
 0x394   :  { %v594_v17 = vpop.f32.mrb[2].mxu0 }
 0x395   :  { %v2095_v18 = vpop.f32.mrb[3].mxu0  ;;  %v836_v50 = vadd.f32 %v2528_v60, %v594_v17 }
 0x397   :  { %v852_v51 = vsel %vm204_vm2, %v836_v50, -inf }
 0x398   :  { %v672_v19 = vpop.f32.mrb[8].mxu1 }
 0x399   :  { %v2100_v20 = vpop.f32.mrb[9].mxu1  ;;  %v837_v48 = vadd.f32 %v2528_v60, %v672_v19 }
 0x39b   :  { %v855_v49 = vsel %vm204_vm2, %v837_v48, -inf }
 0x3a1   :  { %754 = vrot.lane.b32.xlu1 %v2480_v41, %s2391_s14 }
 0x3a5   :  { %1004 = vrot.lane.b32.xlu1 %v2471_v40, %s2393_s1 }
 0x3a7   :  { %676 = vrot.lane.b32.xlu0 %v2480_v41, %s2392_s15 }
 0x3ab   :  { %928 = vrot.lane.b32.xlu0 %v2471_v40, %s2394_s18 }
 0x415   :  { %v842_v21 = vpop.xlane.xlu0 %841 }
 0x416   :  { %v864_v22 = vsub.f32 %v517_v2, %v842_v21 }
 0x418   :  { %v872_v23 = vmul.f32 1.442695, %v864_v22 }
 0x419   :  { %v845_v24 = vpop.xlane.xlu1 %844 }
 0x41a   :  { %2272 = vpow2.f32 %v872_v23  ;;  %v865_v25 = vsub.f32 %v518_v6, %v845_v24 }
 0x41c   :  { %v874_v26 = vmul.f32 1.442695, %v865_v25 }
 0x41d   :  { %v851_v27 = vpop.xlane.xlu1 %850 }
 0x41e   :  { %2274 = vpow2.f32 %v874_v26  ;;  %v867_v28 = vsub.f32 %v520_v10, %v851_v27  ;;  %v848_v29 = vpop.xlane.xlu0 %847 }
 0x41f   :  { %v866_v30 = vsub.f32 %v519_v13, %v848_v29 }
 0x420   :  { %v878_v31 = vmul.f32 1.442695, %v867_v28 }
 0x421   :  { %v876_v32 = vmul.f32 1.442695, %v866_v30  ;;  %v755_v33 = vpop.permute.xlu1 %754 }
 0x422   :  { %2109 = vmatmul.mubr.msk.f32.vlgmr.msra.gmra.mrb[10].mxu1 %vm204_vm2, %v755_v33  ;;  %v677_v34 = vpop.permute.xlu0 %676 }
 0x423   :  { %2276 = vpow2.f32 %v876_v32  ;;  %2104 = vmatmul.mubr.msk.f32.vlgmr.msra.gmra.mrb[4].mxu0 %vm204_vm2, %v677_v34  ;;  %2118 = vmatprep.mubr.msk.f32.mxu1 %vm2385_vm1, %v2384_v36 }
 0x424   :  { %v2273_v35 = vpop.eup %2272  ;;  %2113 = vmatprep.mubr.msk.f32.mxu0 %vm2385_vm1, %v2384_v36  ;;  %2278 = vpow2.f32 %v878_v31 }
 0x425   :  { %v1005_v37 = vpop.permute.xlu1 %1004  ;;  %v888_v38 = vsel %vm204_vm2, %v2273_v35, 0.0 }
 0x426   :  { %2117 = vmatpush3.msra.mxu1 %v1005_v37  ;;  %889 = vadd.xlane.f32.xlu0 %v888_v38  ;;  %v929_v39 = vpop.permute.xlu0 %928 }
 0x427   :  { %2112 = vmatpush3.msra.mxu0 %v929_v39  ;;  %2126 = vmatprep.subr.mxu1 %v2384_v36 }
 0x428   :  { %v2275_v42 = vpop.eup %2274  ;;  %2121 = vmatprep.subr.mxu0 %v2384_v36 }
 0x429   :  { %v891_v43 = vsel %vm204_vm2, %v2275_v42, 0.0 }
 0x42a   :  { %892 = vadd.xlane.f32.xlu1 %v891_v43 }
 0x42d   :  { %v2277_v44 = vpop.eup %2276 }
 0x42e   :  { %v894_v45 = vsel %vm204_vm2, %v2277_v44, 0.0  ;;  %v2279_v46 = vpop.eup %2278 }
 0x42f   :  { %895 = vadd.xlane.f32.xlu0 %v894_v45  ;;  %v897_v47 = vsel %vm204_vm2, %v2279_v46, 0.0 }
 0x433   :  { %898 = vadd.xlane.f32.xlu0 %v897_v47 }
 0x43b   :  { %1156 = vrot.lane.b32.xlu1 %v2471_v40, %s2395_s19 }
 0x449   :  { %1080 = vrot.lane.b32.xlu0 %v2471_v40, %s2396_s20 }
 0x45f   :  { %856 = vmax.xlane.f32.xlu1 %v855_v49 }
 0x468   :  { %853 = vmax.xlane.f32.xlu0 %v852_v51  ;;  %v50_v51 = vld [vmem:[#allocation5 + $0x28] sm:$0xff] }
 0x4b3   :  { %v890_v52 = vpop.xlane.xlu0 %889 }
 0x4b4   :  { %2280 = vrcp.f32 %v890_v52 }
 0x4b7   :  { %v893_v53 = vpop.xlane.xlu1 %892 }
 0x4b8   :  { %2282 = vrcp.f32 %v893_v53  ;;  %v2397_v53 = vmov 0.0|0.0  }
 0x4bb   :  { %v1157_v61 = vpop.permute.xlu1 %1156 }
 0x4bc   :  { %v896_v54 = vpop.xlane.xlu0 %895 }
 0x4bd   :  { %2284 = vrcp.f32 %v896_v54  ;;  %v51_v54 = vld [vmem:[#allocation5 + $0x30] sm:$0xff] }
 0x4be   :  { %v2281_v55 = vpop.eup %2280 }
 0x4bf   :  { %v920_v56 = vmul.f32 %v2281_v55, %v2273_v35  ;;  %v52_v55 = vld [vmem:[#allocation5 + $0x38] sm:$0xff] }
 0x4c0   :  { %v899_v57 = vpop.xlane.xlu0 %898 }
 0x4c1   :  { %2286 = vrcp.f32 %v899_v57  ;;  %2114 = vmatmul.mubr.msk.f32.vlgmr.msra.gmra.mrb[6].mxu0 %vm204_vm2, %v920_v56  ;;  %v2215_v56 = vpack.c.bf16 %v52_v55, %v51_v54  ;;  %v55_v54 = vld [vmem:[#allocation5 + $0x50] sm:$0xff]  ;;  %v56_v55 = vld [vmem:[#allocation5 + $0x58] sm:$0xff] }
 0x4c2   :  { %v2283_v40 = vpop.eup %2282  ;;  %2123 = vmatprep.mubr.msk.f32.mxu0 %vm2385_vm1, %v2384_v36 }
 0x4c3   :  { %v921_v58 = vmul.f32 %v2283_v40, %v2275_v42 }
 0x4c4   :  { %v1081_v59 = vpop.permute.xlu0 %1080 }
 0x4c5   :  { %2119 = vmatmul.mubr.msk.f32.vlgmr.msra.gmra.mrb[12].mxu1 %vm204_vm2, %v921_v58  ;;  %2122 = vmatpush3.msra.mxu0 %v1081_v59 }
 0x4c6   :  { %2127 = vmatpush3.msra.mxu1 %v1157_v61  ;;  %2128 = vmatprep.mubr.msk.f32.mxu1 %vm2385_vm1, %v2384_v36 }
 0x4c7   :  { %v2285_v62 = vpop.eup %2284  ;;  %2142 = vmatprep.subr.mxu1 %v2384_v36  ;;  %2211 = vmatprep.subr.bf16.mxu0 %v2397_v53 }
 0x4c8   :  { %v922_v63 = vmul.f32 %v2285_v62, %v2277_v44 }
 0x4ca   :  { %2124 = vmatmul.mubr.msk.f32.vlgmr.msra.gmra.mrb[8].mxu0 %vm204_vm2, %v922_v63 }
 0x4cb   :  { %v2287_v2 = vpop.eup %2286  ;;  %2139 = vmatprep.mubr.msk.f32.mxu0 %vm2385_vm1, %v2384_v36 }
 0x4cc   :  { %v923_v3 = vmul.f32 %v2287_v2, %v2279_v46 }
 0x4ce   :  { %2129 = vmatmul.mubr.msk.f32.vlgmr.msra.gmra.mrb[14].mxu1 %vm204_vm2, %v923_v3 }
 0x4cf   :  { %2144 = vmatprep.mubr.msk.f32.mxu1 %vm2385_vm1, %v2384_v36 }
 0x4ec   :  { %v857_v4 = vpop.xlane.xlu1 %856 }
 0x4ed   :  { %v869_v5 = vsub.f32 %v837_v48, %v857_v4 }
 0x4ef   :  { %v882_v6 = vmul.f32 1.442695, %v869_v5 }
 0x4f1   :  { %2288 = vpow2.f32 %v882_v6 }
 0x4f5   :  { %v828_v7 = vpop.f32.mrb[10].mxu1  ;;  %v854_v8 = vpop.xlane.xlu0 %853 }
 0x4f6   :  { %v868_v9 = vsub.f32 %v836_v50, %v854_v8  ;;  %v750_v10 = vpop.f32.mrb[4].mxu0  ;;  %v2110_v11 = vpop.f32.mrb[11].mxu1  ;;  %v839_v15 = vadd.f32 %v2528_v60, %v828_v7  ;;  %v49_v50 = vld [vmem:[#allocation5 + $0x20] sm:$0xff] }
 0x4f7   :  { %v838_v12 = vadd.f32 %v2528_v60, %v750_v10  ;;  %v2105_v13 = vpop.f32.mrb[5].mxu0  ;;  %v2212_v52 = vpack.c.bf16 %v50_v51, %v49_v50  ;;  %v53_v51 = vld [vmem:[#allocation5 + $0x40] sm:$0xff] }
 0x4f8   :  { %v880_v14 = vmul.f32 1.442695, %v868_v9  ;;  %v861_v19 = vsel %vm204_vm2, %v839_v15, -inf }
 0x4f9   :  { %v858_v16 = vsel %vm204_vm2, %v838_v12, -inf  ;;  %2213 = vmatpush3.bf16.msra.mxu0 %v2212_v52 }
 0x4fa   :  { %2290 = vpow2.f32 %v880_v14  ;;  %859 = vmax.xlane.f32.xlu0 %v858_v16  ;;  %2214 = vmatprep.subr.bf16.mxu0 %v2397_v53 }
 0x4fb   :  { %v2289_v17 = vpop.eup %2288 }
 0x4fc   :  { %v903_v18 = vsel %vm204_vm2, %v2289_v17, 0.0 }
 0x4fd   :  { %904 = vadd.xlane.f32.xlu1 %v903_v18  ;;  %2216 = vmatpush3.bf16.msra.mxu0 %v2215_v56  ;;  %v1987_v18 = vld [vmem:[#allocation5 + $0xa3] ss:$0 sm:$0xff] }
 0x4fe   :  { %862 = vmax.xlane.f32.xlu0 %v861_v19  ;;  %2152 = vmatprep.subr.mxu0 %v2384_v36 }
 0x504   :  { %v2291_v20 = vpop.eup %2290 }
 0x505   :  { %v900_v21 = vsel %vm204_vm2, %v2291_v20, 0.0 }
 0x506   :  { %901 = vadd.xlane.f32.xlu0 %v900_v21 }
 0x51c   :  { %1322 = vrot.lane.b32.xlu0 %v2480_v41, %s2394_s18 }
 0x520   :  { %1398 = vrot.lane.b32.xlu0 %v2480_v41, %s2393_s1 }
 0x587   :  { %v860_v60 = vpop.xlane.xlu0 %859 }
 0x588   :  { %v870_v22 = vsub.f32 %v838_v12, %v860_v60 }
 0x58a   :  { %v884_v23 = vmul.f32 1.442695, %v870_v22  ;;  %v905_v27 = vpop.xlane.xlu1 %904 }
 0x58b   :  { %v863_v24 = vpop.xlane.xlu0 %862 }
 0x58c   :  { %2292 = vpow2.f32 %v884_v23  ;;  %v871_v25 = vsub.f32 %v839_v15, %v863_v24 }
 0x58e   :  { %v886_v26 = vmul.f32 1.442695, %v871_v25 }
 0x590   :  { %2294 = vpow2.f32 %v886_v26 }
 0x593   :  { %v902_v28 = vpop.xlane.xlu0 %901 }
 0x594   :  { %2296 = vrcp.f32 %v902_v28  ;;  %v1000_v29 = vpop.f32.mrb[6].mxu0 }
 0x595   :  { %v2115_v30 = vpop.f32.mrb[7].mxu0  ;;  %2298 = vrcp.f32 %v905_v27 }
 0x596   :  { %v2585_v31 = vpop.eup %2292 }
 0x597   :  { %v1323_v32 = vpop.permute.xlu0 %1322  ;;  %v906_v33 = vsel %vm204_vm2, %v2585_v31, 0.0 }
 0x598   :  { %v1076_v34 = vpop.f32.mrb[12].mxu1  ;;  %907 = vadd.xlane.f32.xlu0 %v906_v33  ;;  %2143 = vmatpush3.msra.mxu1 %v1323_v32 }
 0x599   :  { %v2120_v35 = vpop.f32.mrb[13].mxu1  ;;  %2147 = vmatprep.subr.mxu1 %v2384_v36 }
 0x59a   :  { %v2295_v37 = vpop.eup %2294 }
 0x59b   :  { %v909_v38 = vsel %vm204_vm2, %v2295_v37, 0.0  ;;  %v1399_v46 = vpop.permute.xlu0 %1398 }
 0x59c   :  { %910 = vadd.xlane.f32.xlu1 %v909_v38 }
 0x59d   :  { %v1152_v39 = vpop.f32.mrb[8].mxu0 }
 0x59e   :  { %v2297_v42 = vpop.eup %2296  ;;  %v2125_v43 = vpop.f32.mrb[9].mxu0 }
 0x59f   :  { %v924_v44 = vmul.f32 %v2297_v42, %v2291_v20  ;;  %v2299_v45 = vpop.eup %2298  ;;  %v1988_v42 = vld [vmem:[#allocation5 + $0xa4] ss:$0 sm:$0xff] }
 0x5a0   :  { %v925_v49 = vmul.f32 %v2299_v45, %v2289_v17 }
 0x5a1   :  { %v1228_v47 = vpop.f32.mrb[14].mxu1  ;;  %2145 = vmatmul.mubr.msk.f32.vlgmr.msra.gmra.mrb[16].mxu1 %vm204_vm2, %v924_v44  ;;  %v1989_v44 = vld [vmem:[#allocation5 + $0xa5] ss:$0 sm:$0xff] }
 0x5a2   :  { %2148 = vmatpush3.msra.mxu1 %v1399_v46  ;;  %v2130_v48 = vpop.f32.mrb[15].mxu1  ;;  %2149 = vmatprep.mubr.msk.f32.mxu1 %vm2385_vm1, %v2384_v36 }
 0x5a3   :  { %2157 = vmatprep.subr.mxu1 %v2384_v36 }
 0x5a5   :  { %2150 = vmatmul.mubr.msk.f32.vlgmr.msra.gmra.mrb[18].mxu1 %vm204_vm2, %v925_v49 }
 0x5a6   :  { %2159 = vmatprep.mubr.msk.f32.mxu1 %vm2385_vm1, %v2384_v36 }
 0x5ad   :  { %1233 = vrot.lane.b32.xlu1 %v1076_v34, %s2382_s23 }
 0x5ae   :  { %1550 = vrot.lane.b32.xlu0 %v2480_v41, %s2395_s19 }
 0x5b1   :  { %1237 = vrot.lane.b32.xlu1 %v1152_v39, %s2398_s21 }
 0x5b5   :  { %1241 = vrot.lane.b32.xlu1 %v1228_v47, %s2399_s24 }
 0x5b9   :  { %1474 = vrot.lane.b32.xlu1 %v2480_v41, %s2396_s20 }
 0x625   :  { %v908_v57 = vpop.xlane.xlu0 %907 }
 0x629   :  { %v911_v40 = vpop.xlane.xlu1 %910  ;;  %v1551_v58 = vpop.permute.xlu0 %1550 }
 0x62a   :  { %2300 = vrcp.f32 %v911_v40  ;;  %2158 = vmatpush3.msra.mxu1 %v1551_v58  ;;  %v58_v40 = vld [vmem:[#allocation5 + $0x68] sm:$0xff]  ;;  %v59_v58 = vld [vmem:[#allocation5 + $0x70] sm:$0xff] }
 0x62b   :  { %2302 = vrcp.f32 %v908_v57  ;;  %v57_v57 = vld [vmem:[#allocation5 + $0x60] sm:$0xff] }
 0x62d   :  { %v1234_v59 = vpop.permute.xlu1 %1233 }
 0x62e   :  { %v1244_v63 = vsel %vm204_vm2, %v1000_v29, %v1234_v59  ;;  %v2231_v59 = vpack.c.bf16 %v58_v40, %v57_v57 }
 0x631   :  { %v1238_v61 = vpop.permute.xlu1 %1237 }
 0x632   :  { %v1246_v3 = vsel %vm1245_vm3, %v1244_v63, %v1238_v61  ;;  %v60_v61 = vld [vmem:[#allocation5 + $0x78] sm:$0xff]  ;;  %v61_v63 = vld [vmem:[#allocation5 + $0x80] sm:$0xff] }
 0x634   :  { %v2301_v62 = vpop.eup %2300 }
 0x635   :  { %v927_v2 = vmul.f32 %v2301_v62, %v2295_v37  ;;  %v1242_v4 = vpop.permute.xlu1 %1241  ;;  %v2303_v5 = vpop.eup %2302  ;;  %v2235_v62 = vpack.c.bf16 %v60_v61, %v59_v58 }
 0x636   :  { %v1248_v41 = vsel %vm1247_vm4, %v1246_v3, %v1242_v4  ;;  %v926_v6 = vmul.f32 %v2303_v5, %v2585_v31 }
 0x637   :  { %2140 = vmatmul.mubr.msk.f32.vlgmr.msra.gmra.mrb[10].mxu0 %vm73_vm0, %v1248_v41  ;;  %2160 = vmatmul.mubr.msk.f32.vlgmr.msra.gmra.mrb[20].mxu1 %vm204_vm2, %v927_v2  ;;  %v62_v2 = vld [vmem:[#allocation5 + $0x88] sm:$0xff] }
 0x638   :  { %2154 = vmatprep.mubr.msk.f32.mxu0 %vm2385_vm1, %v2384_v36  ;;  %v2239_v3 = vpack.c.bf16 %v62_v2, %v61_v63 }
 0x639   :  { %v1475_v7 = vpop.permute.xlu1 %1474 }
 0x63a   :  { %2153 = vmatpush3.msra.mxu0 %v1475_v7 }
 0x63b   :  { %2155 = vmatmul.mubr.msk.f32.vlgmr.msra.gmra.mrb[12].mxu0 %vm204_vm2, %v926_v6  ;;  %2217 = vmatprep.subr.bf16.mxu0 %v2397_v53 }
 0x63c   :  { %2219 = vmatpush3.bf16.msra.mxu0 %v2212_v52  ;;  %2170 = vmatprep.mubr.msk.f32.mxu0 %vm2385_vm1, %v2384_v36  ;;  %v54_v52 = vld [vmem:[#allocation5 + $0x48] sm:$0xff] }
 0x63d   :  { %2220 = vmatprep.subr.bf16.mxu0 %v2397_v53  ;;  %v2223_v53 = vpack.c.bf16 %v54_v52, %v53_v51 }
 0x63f   :  { %2224 = vmatprep.subr.bf16.mxu1 %v2223_v53 }
 0x640   :  { %2222 = vmatpush3.bf16.msra.mxu0 %v2215_v56  ;;  %2226 = vmatpush3.bf16.msra.mxu1 %v2223_v53  ;;  %v2227_v56 = vpack.c.bf16 %v56_v55, %v55_v54 }
 0x641   :  { %2232 = vmatprep.subr.bf16.mxu0 %v2231_v59 }
 0x642   :  { %2228 = vmatprep.subr.bf16.mxu1 %v2227_v56 }
 0x644   :  { %2230 = vmatpush3.bf16.msra.mxu1 %v2227_v56 }
 0x674   :  { %v1394_v8 = vpop.f32.mrb[16].mxu1 }
 0x675   :  { %v2146_v9 = vpop.f32.mrb[17].mxu1 }
 0x678   :  { %v1470_v10 = vpop.f32.mrb[18].mxu1 }
 0x679   :  { %1627 = vrot.lane.b32.xlu1 %v1470_v10, %s2382_s23  ;;  %v2151_v11 = vpop.f32.mrb[19].mxu1  ;;  %v63_v10 = vld [vmem:[#allocation5 + $0x90] sm:$0xff] }
 0x67a   :  { %v64_v11 = vld [vmem:[#allocation5 + $0x98] sm:$0xff] }
 0x6eb   :  { %v1628_v21 = vpop.permute.xlu1 %1627 }
 0x6ec   :  { %v1638_v60 = vsel %vm204_vm2, %v1394_v8, %v1628_v21 }
 0x70a   :  { %v1318_v12 = vpop.f32.mrb[10].mxu0  ;;  %v1622_v13 = vpop.f32.mrb[20].mxu1 }
 0x70b   :  { %v2141_v14 = vpop.f32.mrb[11].mxu0  ;;  %1635 = vrot.lane.b32.xlu1 %v1622_v13, %s2399_s24  ;;  %v2161_v15 = vpop.f32.mrb[21].mxu1  ;;  %v1714_v36 = vadd.f32 %v1318_v12, %v2451_v0  ;;  %v2243_v12 = vpack.c.bf16 %v64_v11, %v63_v10  ;;  %v1990_v13 = vld [vmem:[#allocation5 + $0xa7] ss:$0 sm:$0xff] }
 0x70d   :  { %v2621_v19 = vadd.f32 %v1987_v18, %v1714_v36 }
 0x70e   :  { %v1546_v16 = vpop.f32.mrb[12].mxu0 }
 0x70f   :  { %1631 = vrot.lane.b32.xlu0 %v1546_v16, %s2398_s21  ;;  %v2156_v17 = vpop.f32.mrb[13].mxu0  ;;  %v1722_v20 = vsel %vm73_vm0, %v2621_v19, 0.0 }
 0x72e   :  { %1723 = vadd.xlane.f32.xlu0 %v1722_v20  ;;  %v1993_v20 = vld [vmem:[#allocation5 + $0xa6] ss:$0 sm:$0xff] }
 0x77d   :  { %v1636_v23 = vpop.permute.xlu1 %1635 }
 0x781   :  { %v1632_v22 = vpop.permute.xlu0 %1631 }
 0x782   :  { %v1639_v24 = vsel %vm1245_vm3, %v1638_v60, %v1632_v22 }
 0x783   :  { %v1640_v25 = vsel %vm1247_vm4, %v1639_v24, %v1636_v23 }
 0x784   :  { %2171 = vmatmul.mubr.msk.f32.vlgmr.msra.gmra.mrb[14].mxu0 %vm73_vm0, %v1640_v25 }
 0x785   :  { %2234 = vmatpush3.bf16.msra.mxu0 %v2231_v59 }
 0x786   :  { %2236 = vmatprep.subr.bf16.mxu0 %v2235_v62 }
 0x789   :  { %2238 = vmatpush3.bf16.msra.mxu0 %v2235_v62 }
 0x78a   :  { %2240 = vmatprep.subr.bf16.mxu0 %v2239_v3 }
 0x78d   :  { %2242 = vmatpush3.bf16.msra.mxu0 %v2239_v3 }
 0x78e   :  { %2244 = vmatprep.subr.bf16.mxu0 %v2243_v12 }
 0x791   :  { %2246 = vmatpush3.bf16.msra.mxu0 %v2243_v12 }
 0x7bb   :  { %v1724_v26 = vpop.xlane.xlu0 %1723 }
 0x7bc   :  { %v1728_v0 = vmul.f32 0.03125, %v1724_v26 }
 0x7be   :  { %v1730_v27 = vsub.f32 %v2621_v19, %v1728_v0 }
 0x7c0   :  { %v1732_v28 = vmul.f32 %v1730_v27, %v1730_v27 }
 0x7c2   :  { %v1734_v29 = vsel %vm73_vm0, %v1732_v28, 0.0 }
 0x7c3   :  { %1735 = vadd.xlane.f32.xlu0 %v1734_v29 }
 0x850   :  { %v1736_v30 = vpop.xlane.xlu0 %1735 }
 0x851   :  { %v1740_v31 = vmul.f32 0.03125, %v1736_v30 }
 0x853   :  { %v1742_v32 = vadd.f32 1e-06, %v1740_v31 }
 0x855   :  { %2304 = vrsqrt.f32 %v1742_v32 }
 0x857   :  { %v1710_v33 = vpop.f32.mrb[14].mxu0 }
 0x858   :  { %v1715_v34 = vadd.f32 %v1710_v33, %v2453_v1  ;;  %v2172_v35 = vpop.f32.mrb[15].mxu0 }
 0x85a   :  { %v2632_v37 = vadd.f32 %v1987_v18, %v1715_v34 }
 0x85c   :  { %v1725_v38 = vsel %vm73_vm0, %v2632_v37, 0.0 }
 0x85d   :  { %1726 = vadd.xlane.f32.xlu1 %v1725_v38 }
 0x85f   :  { %v2305_v39 = vpop.eup %2304 }
 0x860   :  { %v1746_v43 = vmul.f32 %v2305_v39, %v1730_v27 }
 0x862   :  { %v1752_v45 = vmul.f32 %v1988_v42, %v1746_v43 }
 0x864   :  { %v1758_v46 = vadd.f32 %v1989_v44, %v1752_v45 }
 0x866   :  { %2181 = vmatprep.mubr.msk.f32.mxu1 %vm73_vm0, %v1758_v46 }
 0x8ea   :  { %v1727_v47 = vpop.xlane.xlu1 %1726 }
 0x8eb   :  { %v1729_v48 = vmul.f32 0.03125, %v1727_v47 }
 0x8ed   :  { %v1731_v49 = vsub.f32 %v2632_v37, %v1729_v48 }
 0x8ef   :  { %v1733_v1 = vmul.f32 %v1731_v49, %v1731_v49 }
 0x8f1   :  { %v1737_v50 = vsel %vm73_vm0, %v1733_v1, 0.0 }
 0x8f2   :  { %1738 = vadd.xlane.f32.xlu0 %v1737_v50 }
 0x97f   :  { %v1739_v4 = vpop.xlane.xlu0 %1738 }
 0x980   :  { %v1741_v5 = vmul.f32 0.03125, %v1739_v4 }
 0x982   :  { %v1743_v41 = vadd.f32 1e-06, %v1741_v5 }
 0x984   :  { %2306 = vrsqrt.f32 %v1743_v41 }
 0x98e   :  { %v2307_v6 = vpop.eup %2306 }
 0x98f   :  { %v1747_v7 = vmul.f32 %v2307_v6, %v1731_v49 }
 0x991   :  { %v1753_v8 = vmul.f32 %v1988_v42, %v1747_v7 }
 0x993   :  { %v1759_v9 = vadd.f32 %v1989_v44, %v1753_v8 }
 0x995   :  { %2182 = vmatmul.mubr.msk.f32.vlgmr.msra.gmra.mrb[22].mxu1 %vm73_vm0, %v1759_v9 }
 0xa68   :  { %v2183_v14 = vpop.f32.mrb[22].mxu1 }
 0xa69   :  { %v1842_v15 = vadd.f32 %v2183_v14, %v1990_v13  ;;  %v1836_v16 = vpop.f32.mrb[23].mxu1 }
 0xa6a   :  { %v1837_v17 = vadd.f32 %v1990_v13, %v1836_v16 }
 0xa6b   :  { %v1846_v18 = vmax.f32 %v1842_v15, 0.0 }
 0xa6c   :  { %v1845_v36 = vmax.f32 %v1837_v17, 0.0 }
 0xa6e   :  { %2200 = vmatprep.mubr.msk.f32.mxu0 %vm1851_vm5, %v1845_v36 }
 0xa6f   :  { %2201 = vmatmul.mubr.msk.f32.vlgmr.msra.gmra.mrb[16].mxu0 %vm1851_vm5, %v1846_v18 }
 0xb42   :  { %v2202_v21 = vpop.f32.mrb[16].mxu0 }
 0xb43   :  { %v1930_v60 = vadd.f32 %v2202_v21, %v1993_v20  ;;  %v1924_v22 = vpop.f32.mrb[17].mxu0 }
 0xb44   :  { %v1925_v23 = vadd.f32 %v1993_v20, %v1924_v22 }
 0xb45   :  { %v1934_v24 = vadd.f32 %v1930_v60, %v2632_v37 }
 0xb46   :  { %v1933_v25 = vadd.f32 %v1925_v23, %v2621_v19 }
 0xb47   :  { %1936 = vst.msk [vmem:[#allocation7 + $0x8] sm:$0xff] %vm73_vm0, %v1934_v24 }
 0xb48   :  { %1935 = vst.msk [vmem:[#allocation7] sm:$0xff] %vm73_vm0, %v1933_v25 }
 0xb49   :  { %2363 = shalt.err (!%p2360_p6)
}
 0xb4a   :  { %s2364_s30 = scalar_lea.hbm %s2662_s3, 256 }
 0xb4b   :  { %p2365_p7 = scmp.ne.s32.totalorder %s2662_s3, %s2364_s30  ;;  %p2368_p8 = scmp.lt.u32.totalorder %s2364_s30, %s2662_s3 }
 0xb4d   :  { %p2370_p9 = pnand %p2368_p8, %p2365_p7 }
 0xb4f   :  { %2373 = shalt.err (!%p2370_p9)
}
 0xb50   :  { %1948 = dma.vmem_to_hbm [thread:$0]  %s1943_s26, 256, %s2662_s3, [#allocation4], %s2381_s22, %s2381_s22, %s2382_s23  }
 0xb51   :  { %2378 = dma.done.wait [#allocation4], 256  }
 0xb52   :  { %2379 = vsyncadd [#allocation4], 4294967040 }
 0xb53   :  { %1952 = vsyncpa [#allocation3], 1 }
 0xb54   :  { %1953 = vsyncpa [#allocation6], 1 }
 0xb55   :  { %1954 = vsyncpa [#allocation4], 1 }

</bundles_post_ra>
